<compile_context>
chip_gen: v6e
topology: v6e:2x2x1
jax: 0.10.0
libtpu: 0.0.40
codegen_flags: <defaults>
</compile_context>

<pallas_src>
import functools
import math

import jax
import jax.numpy as jnp
from jax.experimental import pallas as pl
from jax.experimental.pallas import tpu as pltpu


_GROUP = 8                    # tokens per dense (8, E) store
_GATHER_GROUPS_IN_FLIGHT = 2  # fallback: 2 groups * 8 rows = 16 row DMAs in flight


def _round_up(a, b):
    return (a + b - 1) // b * b


def _vmem_capacity_bytes():
    """Physical VMEM of the running chip (conservative default if unknown)."""
    try:
        info = pltpu.get_tpu_info()
        cap = int(getattr(info, "vmem_capacity_bytes", 0))
        if cap > 0:
            return cap
    except Exception:
        pass
    return 64 * 1024 * 1024   # v7x per-core VMEM (smallest of the targets)


# ----------------------------------------------------------------------------
# Fast path: whole table resident in VMEM.
# ----------------------------------------------------------------------------
def _resident_kernel(ids_ref, table_ref, out_ref, *, scale, chunk):
    """Gather `chunk` rows from the VMEM-resident table, 8 rows per store."""
    base = pl.program_id(0) * chunk
    n_micro = chunk // _GROUP

    @pl.loop(0, n_micro)
    def _(m):
        t0 = base + m * _GROUP
        # 8 unrolled dynamic row reads -> one dense (8, E) slab -> one store.
        rows = [table_ref[pl.ds(ids_ref[t0 + r], 1), :] for r in range(_GROUP)]
        block = jnp.concatenate(rows, axis=0).astype(jnp.float32) * scale
        off = pl.multiple_of(m * _GROUP, _GROUP)
        out_ref[pl.ds(off, _GROUP), :] = block.astype(out_ref.dtype)


# ----------------------------------------------------------------------------
# Fallback: table in HBM, manual multi-in-flight DMA gather.
# ----------------------------------------------------------------------------
def _gather_kernel(ids_ref, table_hbm, out_ref, buf, sems, *, scale, chunk, depth):
    """Ring of `depth` groups (8 row DMAs each) gathered into a (T, E) tile."""
    base = pl.program_id(0) * chunk
    n_groups = chunk // _GROUP

    def copy_desc(tok, slot, r):
        return pltpu.make_async_copy(
            table_hbm.at[pl.ds(tok, 1), :],
            buf.at[slot, pl.ds(r, 1), :],
            sems.at[slot, r])

    def start_group(g):
        slot = g % depth
        for r in range(_GROUP):
            tok = ids_ref[base + g * _GROUP + r]
            copy_desc(tok, slot, r).start()

    def wait_group(g):
        slot = g % depth
        for r in range(_GROUP):
            copy_desc(0, slot, r).wait()   # dummy src of identical shape

    # Prime the ring (static trip count).
    for g in range(min(depth, n_groups)):
        start_group(g)

    @pl.loop(0, n_groups)
    def _(g):
        wait_group(g)
        slot = g % depth
        block = buf[slot].astype(jnp.float32) * scale          # (8, E)
        off = pl.multiple_of(g * _GROUP, _GROUP)
        out_ref[pl.ds(off, _GROUP), :] = block.astype(out_ref.dtype)
        nxt = g + depth

        @pl.when(nxt < n_groups)
        def _():
            start_group(nxt)


# ----------------------------------------------------------------------------
# Wrapper.
# ----------------------------------------------------------------------------
def embeddings_forward(x, table, emb_size, *, chunk_tokens=1024,
                       max_resident_vmem_bytes=None,
                       out_dtype=None, table_storage_dtype=None):
    """x: (B, S) int token ids; table: (V, E) float.  Returns (B, S, E)."""
    B, S = x.shape
    V, E = table.shape
    assert E == emb_size
    out_dtype = jnp.dtype(table.dtype if out_dtype is None else out_dtype)
    if table_storage_dtype is not None:
        table = table.astype(table_storage_dtype)   # e.g. bf16 halves HBM/VMEM traffic
    scale = float(math.sqrt(emb_size))

    # Clamp ids (avoid data-dependent OOB DMA/reads), flatten.
    ids = jnp.clip(x.reshape(-1).astype(jnp.int32), 0, V - 1)
    N = B * S

    table_itemsize = jnp.dtype(table.dtype).itemsize
    out_itemsize = out_dtype.itemsize
    table_bytes = V * E * table_itemsize

    # Generation-aware resident threshold (v5e/v6e: 128 MiB, v7x: 64 MiB).
    vmem_cap = _vmem_capacity_bytes()
    resident_cap = (int(0.85 * vmem_cap) if max_resident_vmem_bytes is None
                    else int(max_resident_vmem_bytes))

    slack = 4 << 20
    min_tile_bytes = 2 * _GROUP * E * out_itemsize
    # Table is an un-tiled VMEM operand -> single copy (no double buffering).
    resident = (table_bytes + min_tile_bytes + slack) <= resident_cap

    # Chunk size: biggest multiple of 8 whose double-buffered output tile fits.
    if resident:
        out_budget = max(resident_cap - table_bytes - slack, min_tile_bytes)
    else:
        out_budget = max(int(0.85 * vmem_cap) - slack, min_tile_bytes)
    t_cap = max(_GROUP, (out_budget // (2 * E * out_itemsize)))
    T = int(min(int(chunk_tokens), t_cap, _round_up(N, _GROUP)))
    T = max(_GROUP, (T // _GROUP) * _GROUP)

    N_pad = _round_up(N, T)
    if N_pad != N:
        ids = jnp.pad(ids, (0, N_pad - N))   # pad id 0 (valid row, sliced off later)

    # Bound the scalar-prefetched ids per pallas_call so SMEM never blows up;
    # long sequences are split over the token axis here in the wrapper.
    MAX_IDS_PER_CALL = 32768
    seg = max(T, (MAX_IDS_PER_CALL // T) * T)

    def run(ids_seg):
        n_seg = ids_seg.shape[0]
        num_chunks = n_seg // T

        if resident:
            grid_spec = pltpu.PrefetchScalarGridSpec(
                num_scalar_prefetch=1,
                grid=(num_chunks,),
                # Whole table lives in VMEM, copied once (single-buffered).
                in_specs=[pl.BlockSpec(memory_space=pltpu.MemorySpace.VMEM)],
                out_specs=pl.BlockSpec((T, E), lambda i, ids_ref: (i, 0)),
            )
            kernel = functools.partial(_resident_kernel, scale=scale, chunk=T)
            need = table_bytes + 2 * T * E * out_itemsize + slack
            params = pltpu.CompilerParams(
                dimension_semantics=("parallel",),
                vmem_limit_bytes=int(min(vmem_cap, max(need, 32 * 1024 * 1024))),
            )
            cost = pl.CostEstimate(
                flops=n_seg * E, transcendentals=0,
                bytes_accessed=table_bytes + n_seg * 4 + n_seg * E * out_itemsize)
        else:
            depth = _GATHER_GROUPS_IN_FLIGHT
            grid_spec = pltpu.PrefetchScalarGridSpec(
                num_scalar_prefetch=1,
                grid=(num_chunks,),
                in_specs=[pl.BlockSpec(memory_space=pl.ANY)],   # table stays in HBM
                out_specs=pl.BlockSpec((T, E), lambda i, ids_ref: (i, 0)),
                scratch_shapes=[
                    pltpu.VMEM((depth, _GROUP, E), table.dtype),
                    pltpu.SemaphoreType.DMA((depth, _GROUP)),
                ],
            )
            kernel = functools.partial(_gather_kernel, scale=scale, chunk=T, depth=depth)
            need = (depth * _GROUP * E * table_itemsize
                    + 2 * T * E * out_itemsize + slack)
            params = pltpu.CompilerParams(
                dimension_semantics=("arbitrary",),
                vmem_limit_bytes=int(min(vmem_cap, max(need, 32 * 1024 * 1024))),
            )
            cost = pl.CostEstimate(
                flops=n_seg * E, transcendentals=0,
                bytes_accessed=(n_seg * E * table_itemsize    # one HBM row read / token
                                + n_seg * 4
                                + n_seg * E * out_itemsize))

        return pl.pallas_call(
            kernel,
            out_shape=jax.ShapeDtypeStruct((n_seg, E), out_dtype),
            grid_spec=grid_spec,
            compiler_params=params,
            cost_estimate=cost,
        )(ids_seg, table)

    if N_pad <= seg:
        out_flat = run(ids)
    else:
        parts = [run(ids[s:s + seg]) for s in range(0, N_pad, seg)]
        out_flat = jnp.concatenate(parts, axis=0)

    return out_flat[:N].reshape(B, S, E)


if __name__ == "__main__":
    key = jax.random.PRNGKey(0)
    k_tab, k_ids = jax.random.split(key)

    vocab = 50
    emb_size = 32
    batch, seq = 2, 8

    # Deterministic synthetic "parameters" (nn.Embedding weight equivalent).
    table = jax.random.normal(k_tab, (vocab, emb_size), dtype=jnp.float32)
    x = jax.random.randint(k_ids, (batch, seq), 0, vocab, dtype=jnp.int32)

    ref = jnp.take(table, x, axis=0) * math.sqrt(emb_size)

    # Fast path: whole table resident in VMEM.
    out = jax.block_until_ready(embeddings_forward(x, table, emb_size))
    assert out.shape == (batch, seq, emb_size)
    assert jnp.allclose(out, ref, atol=1e-5, rtol=1e-5)

    # Fallback path (table treated as too large for VMEM), exercised at small size.
    out_fb = jax.block_until_ready(
        embeddings_forward(x, table, emb_size, max_resident_vmem_bytes=0))
    assert out_fb.shape == (batch, seq, emb_size)
    assert jnp.allclose(out_fb, ref, atol=1e-5, rtol=1e-5)

    print("KERNEL_OK")
</pallas_src>

<mosaic_0001>
module attributes {stable_mosaic.version = 11 : i64} {
  func.func @_resident_kernel(%arg0: i32, %arg1: memref<16xi32, #tpu.memory_space<smem>>, %arg2: memref<50x32xf32, #tpu.memory_space<vmem>>, %arg3: memref<16x32xf32, #tpu.memory_space<vmem>>) attributes {dimension_semantics = [#tpu.dimension_semantics<parallel>], iteration_bounds = array<i64: 1>, scalar_prefetch = 1 : i64, scratch_operands = 0 : i64, tpu.core_type = #tpu.core_type<tc>, window_params = [{pipeline_mode = #tpu.pipeline_mode<synchronous>, transform_indices = @transform_0, window_bounds = array<i64: 50, 32>}, {transform_indices = @transform_1, window_bounds = array<i64: 16, 32>}]} {
    %c16_i32 = arith.constant 16 : i32
    %0 = arith.muli %arg0, %c16_i32 : i32
    %c0_i32 = arith.constant 0 : i32
    %c2_i32 = arith.constant 2 : i32
    %1 = arith.addi %c0_i32, %c2_i32 : i32
    %c1_i32 = arith.constant 1 : i32
    scf.for %arg4 = %c0_i32 to %1 step %c1_i32  : i32 {
      %c1_i32_1 = arith.constant 1 : i32
      %2 = arith.muli %arg4, %c1_i32_1 : i32
      %c0_i32_2 = arith.constant 0 : i32
      %3 = arith.addi %c0_i32_2, %2 : i32
      %c8_i32 = arith.constant 8 : i32
      %4 = arith.muli %3, %c8_i32 : i32
      %5 = arith.addi %0, %4 : i32
      %c0_i32_3 = arith.constant 0 : i32
      %6 = arith.addi %5, %c0_i32_3 : i32
      %7 = arith.index_cast %6 : i32 to index
      %8 = memref.load %arg1[%7] : memref<16xi32, #tpu.memory_space<smem>>
      %9 = arith.index_cast %8 : i32 to index
      %c0 = arith.constant 0 : index
      %10 = vector.load %arg2[%9, %c0] : memref<50x32xf32, #tpu.memory_space<vmem>>, vector<1x32xf32>
      %c1_i32_4 = arith.constant 1 : i32
      %11 = arith.addi %5, %c1_i32_4 : i32
      %12 = arith.index_cast %11 : i32 to index
      %13 = memref.load %arg1[%12] : memref<16xi32, #tpu.memory_space<smem>>
      %14 = arith.index_cast %13 : i32 to index
      %c0_5 = arith.constant 0 : index
      %15 = vector.load %arg2[%14, %c0_5] : memref<50x32xf32, #tpu.memory_space<vmem>>, vector<1x32xf32>
      %c2_i32_6 = arith.constant 2 : i32
      %16 = arith.addi %5, %c2_i32_6 : i32
      %17 = arith.index_cast %16 : i32 to index
      %18 = memref.load %arg1[%17] : memref<16xi32, #tpu.memory_space<smem>>
      %19 = arith.index_cast %18 : i32 to index
      %c0_7 = arith.constant 0 : index
      %20 = vector.load %arg2[%19, %c0_7] : memref<50x32xf32, #tpu.memory_space<vmem>>, vector<1x32xf32>
      %c3_i32 = arith.constant 3 : i32
      %21 = arith.addi %5, %c3_i32 : i32
      %22 = arith.index_cast %21 : i32 to index
      %23 = memref.load %arg1[%22] : memref<16xi32, #tpu.memory_space<smem>>
      %24 = arith.index_cast %23 : i32 to index
      %c0_8 = arith.constant 0 : index
      %25 = vector.load %arg2[%24, %c0_8] : memref<50x32xf32, #tpu.memory_space<vmem>>, vector<1x32xf32>
      %c4_i32 = arith.constant 4 : i32
      %26 = arith.addi %5, %c4_i32 : i32
      %27 = arith.index_cast %26 : i32 to index
      %28 = memref.load %arg1[%27] : memref<16xi32, #tpu.memory_space<smem>>
      %29 = arith.index_cast %28 : i32 to index
      %c0_9 = arith.constant 0 : index
      %30 = vector.load %arg2[%29, %c0_9] : memref<50x32xf32, #tpu.memory_space<vmem>>, vector<1x32xf32>
      %c5_i32 = arith.constant 5 : i32
      %31 = arith.addi %5, %c5_i32 : i32
      %32 = arith.index_cast %31 : i32 to index
      %33 = memref.load %arg1[%32] : memref<16xi32, #tpu.memory_space<smem>>
      %34 = arith.index_cast %33 : i32 to index
      %c0_10 = arith.constant 0 : index
      %35 = vector.load %arg2[%34, %c0_10] : memref<50x32xf32, #tpu.memory_space<vmem>>, vector<1x32xf32>
      %c6_i32 = arith.constant 6 : i32
      %36 = arith.addi %5, %c6_i32 : i32
      %37 = arith.index_cast %36 : i32 to index
      %38 = memref.load %arg1[%37] : memref<16xi32, #tpu.memory_space<smem>>
      %39 = arith.index_cast %38 : i32 to index
      %c0_11 = arith.constant 0 : index
      %40 = vector.load %arg2[%39, %c0_11] : memref<50x32xf32, #tpu.memory_space<vmem>>, vector<1x32xf32>
      %c7_i32 = arith.constant 7 : i32
      %41 = arith.addi %5, %c7_i32 : i32
      %42 = arith.index_cast %41 : i32 to index
      %43 = memref.load %arg1[%42] : memref<16xi32, #tpu.memory_space<smem>>
      %44 = arith.index_cast %43 : i32 to index
      %c0_12 = arith.constant 0 : index
      %45 = vector.load %arg2[%44, %c0_12] : memref<50x32xf32, #tpu.memory_space<vmem>>, vector<1x32xf32>
      %46 = tpu.concatenate %10, %15, %20, %25, %30, %35, %40, %45 in 0 : vector<1x32xf32>, vector<1x32xf32>, vector<1x32xf32>, vector<1x32xf32>, vector<1x32xf32>, vector<1x32xf32>, vector<1x32xf32>, vector<1x32xf32> -> vector<8x32xf32>
      %cst = arith.constant 5.65685415 : f32
      %47 = vector.broadcast %cst : f32 to vector<8x32xf32>
      %48 = arith.mulf %46, %47 : vector<8x32xf32>
      %c8_i32_13 = arith.constant 8 : i32
      %49 = arith.muli %3, %c8_i32_13 : i32
      %50 = tpu.assume_multiple %49, 8 : i32
      %51 = arith.index_cast %50 : i32 to index
      %c0_14 = arith.constant 0 : index
      %52 = vector.load %arg3[%51, %c0_14] : memref<16x32xf32, #tpu.memory_space<vmem>>, vector<8x32xf32>
      tpu.vector_store %arg3[%51, %c0_14], %48 {strides = array<i32>} : memref<16x32xf32, #tpu.memory_space<vmem>>, vector<8x32xf32>,
    }
    %c2_i32_0 = arith.constant 2 : i32
    return
  }
  func.func @transform_0(%arg0: i32, %arg1: memref<16xi32, #tpu.memory_space<smem>>) -> (i32, i32) {
    %c0_i32 = arith.constant 0 : i32
    %c0_i32_0 = arith.constant 0 : i32
    %c0_i32_1 = arith.constant 0 : i32
    return %c0_i32, %c0_i32_0 : i32, i32
  }
  func.func @transform_1(%arg0: i32, %arg1: memref<16xi32, #tpu.memory_space<smem>>) -> (i32, i32) {
    %c0_i32 = arith.constant 0 : i32
    %c0_i32_0 = arith.constant 0 : i32
    return %arg0, %c0_i32 : i32, i32
  }
}

</mosaic_0001>

<bundles_post_ra>
// kernel: tpu_custom_call.1
= control target key start
LH: loop header
LB: loop body
LE: loop exit
PB: predicated region body
PF: predicated region fallthrough
CT: control target
= control target key end

     0   :  { %s252_s0 = inlined_call_operand.vmem [shape: s32[16], index: 0, kind: input, shape index: {}]   ;;  %s253_s1 = inlined_call_operand.vmem [shape: f32[50,32], index: 1, kind: input, shape index: {}]   ;;  %s254_s2 = inlined_call_operand.hbm [shape: f32[16,32], index: 2, kind: output, shape index: {}]  }
   0x1   :  { %s7_s11 = sshll.u32 %s252_s0, 4  ;;  %s8_s11 = int_to_ptr.vmem [resolvable:$true] %s7_s11 }
   0x2   :  { %s139_s12 = scalar_lea.vmem %s8_s11, 16  ;;  %p144_p1 = scmp.lt.s32.totalorder %s8_s11, %s8_s11 }
   0x3   :  { %p140_p0 = scmp.ne.s32.totalorder %s8_s11, %s139_s12  ;;  %p145_p2 = scmp.lt.s32.totalorder %s139_s12, %s139_s12 }
   0x5   :  { %p146_p3 = por %p145_p2, %p144_p1 }
   0x7   :  { %p147_p4 = pnand %p146_p3, %p140_p0 }
   0x9   :  { %150 = shalt.err (!%p147_p4)  }
   0xa   :  { %s183_s13 = smov [#allocation3]  }
   0xb   :  { %10 = dma.vmem_to_smem %s8_s11, 16, %s183_s13, [#allocation2] }
   0xc   :  { %175 = dma.done.wait [#allocation2], 16 }
   0xd   :  { %176 = vsyncadd [#allocation2], 4294967280 }
   0xe   :  { %12 = sfence }
   0xf   :  { %13 = vsyncpa [#allocation5], 0  ;;  %s205_s14 = smov 0  }
  0x10 LB: > { %s211_s0 = sshll.u32 %s181_s14, 3  ;;  %vm77_vm0 = vcmask 1040384   ;;  %vm79_vm1 = vcmask 1041408   ;;  %vm81_vm2 = vcmask 1042432   ;;  %vm83_vm3 = vcmask 1043456   ;;  %s22_s14 = sadd.s32 1, %s181_s14   ;;  %s181_s14 = sphi %s205_s14, %s22_s14  }
  0x11   : > { %s25_s15 = sld [smem:[#allocation3 + %s211_s0]]  ;;  %s28_s16 = sadd.s32 1, %s211_s0  ;;  %vm85_vm4 = vcmask 1044480   ;;  %vm87_vm5 = vcmask 1045504   ;;  %vm89_vm6 = vcmask 1046528   ;;  %vm93_vm7 = vcmask 261120  }
  0x12   : > { %s29_s17 = sld [smem:[#allocation3 + %s28_s16]]  ;;  %s32_s18 = sadd.s32 2, %s211_s0 }
  0x13   : > { %s33_s19 = sld [smem:[#allocation3 + %s32_s18]]  ;;  %s36_s20 = sadd.s32 3, %s211_s0 }
  0x14   : > { %s37_s21 = sld [smem:[#allocation3 + %s36_s20]]  ;;  %s40_s22 = sadd.s32 4, %s211_s0 }
  0x15   : > { %s41_s23 = sld [smem:[#allocation3 + %s40_s22]]  ;;  %s44_s24 = sadd.s32 5, %s211_s0 }
  0x16   : > { %s45_s25 = sld [smem:[#allocation3 + %s44_s24]]  ;;  %s48_s26 = sadd.s32 6, %s211_s0 }
  0x17   : > { %s26_s29 = scalar_lea.vmem %s253_s1, %s25_s15  ;;  %s49_s30 = sld [smem:[#allocation3 + %s48_s26]] }
  0x18   : > { %s30_s5 = scalar_lea.vmem %s253_s1, %s29_s17  ;;  %s52_s6 = sadd.s32 7, %s211_s0  ;;  %v27_v0 = vld [vmem:[%s26_s29] sm:$0x1] }
  0x19   : > { %v31_v1 = vld [vmem:[%s30_s5] sm:$0x1]  ;;  %s34_s9 = scalar_lea.vmem %s253_s1, %s33_s19  ;;  %s53_s10 = sld [smem:[#allocation3 + %s52_s6]] }
  0x1a   : > { %v35_v2 = vld [vmem:[%s34_s9] sm:$0x1]  ;;  %s38_s13 = scalar_lea.vmem %s253_s1, %s37_s21  ;;  %v57_v3 = vrot.slane %v31_v1, 7  ;;  %s92_s27 = scalar_lea.vmem [#allocation4], %s211_s0 }
  0x1b   : > { %v39_v4 = vld [vmem:[%s38_s13] sm:$0x1]  ;;  %s42_s17 = scalar_lea.vmem %s253_s1, %s41_s23  ;;  %v60_v5 = vrot.slane %v35_v2, 6  ;;  %p19_p5 = scmp.ge.s32.totalorder %s22_s14, 2  }
  0x1c   : > { %v43_v6 = vld [vmem:[%s42_s17] sm:$0x1]  ;;  %s46_s19 = scalar_lea.vmem %s253_s1, %s45_s25  ;;  %v63_v7 = vrot.slane %v39_v4, 5  ;;  %v78_v8 = vsel %vm77_vm0, %v27_v0, %v57_v3  ;;  %s184_s28 = smov (%p19_p5), [#allocation4]  }
  0x1d   : > { %v47_v9 = vld [vmem:[%s46_s19] sm:$0x1]  ;;  %s50_s24 = scalar_lea.vmem %s253_s1, %s49_s30  ;;  %v66_v10 = vrot.slane %v43_v6, 4  ;;  %v80_v11 = vsel %vm79_vm1, %v78_v8, %v60_v5  ;;  %s100_s29 = sshll.u32 (%p19_p5), %s184_s28, 4  ;;  %s101_s29 = int_to_ptr.vmem [resolvable:$true] %s100_s29 }
  0x1e   : > { %v51_v12 = vld [vmem:[%s50_s24] sm:$0x1]  ;;  %v69_v13 = vrot.slane %v47_v9, 3  ;;  %v82_v14 = vsel %vm81_vm2, %v80_v11, %v63_v7  ;;  %s151_s30 = scalar_lea.vmem (%p19_p5), %s101_s29, 256  ;;  %p156_p7 = scmp.lt.s32.totalorder (%p19_p5), %s101_s29, %s101_s29 }
  0x1f   : > { %s54_s25 = scalar_lea.vmem %s253_s1, %s53_s10  ;;  %v72_v15 = vrot.slane %v51_v12, 2  ;;  %v84_v16 = vsel %vm83_vm3, %v82_v14, %v66_v10  ;;  %p152_p6 = scmp.ne.s32.totalorder (%p19_p5), %s101_s29, %s151_s30 }
  0x20   : > { %v55_v17 = vld [vmem:[%s54_s25] sm:$0x1]  ;;  %v86_v18 = vsel %vm85_vm4, %v84_v16, %v69_v13  ;;  %p157_p8 = scmp.lt.s32.totalorder (%p19_p5), %s151_s30, %s151_s30 }
  0x21   : > { %v75_v19 = vrot.slane %v55_v17, 1  ;;  %v88_v20 = vsel %vm87_vm5, %v86_v18, %v72_v15 }
  0x22   :  { %21 = sbr.rel (!%p19_p5) target bundleno = 16 (0x10), region = 40  ;;  %p158_p9 = por (%p19_p5), %p157_p8, %p156_p7 }
  0x23   : > { %v90_v21 = vsel %vm89_vm6, %v88_v20, %v75_v19 }
  0x24   : > { %v91_v22 = vmul.f32 5.656854, %v90_v21  ;;  %p159_p10 = pnand (%p19_p5), %p158_p9, %p152_p6 }
  0x26   : > { %94 = vst.msk [vmem:[%s92_s27] sm:$0xff] %vm93_vm7, %v91_v22 }
  0x27   :  { %162 = shalt.err (!%p159_p10)
}
  0x28   :  { %s185_s3 = smov 128   ;;  %s186_s4 = smov 8  }
  0x29   :  { %106 = dma.vmem_to_hbm [thread:$0]  %s101_s29, 256, %s254_s2, [#allocation5], %s185_s3, %s185_s3, %s186_s4  }
  0x2a   :  { %177 = dma.done.wait [#allocation5], 256  }
  0x2b   :  { %178 = vsyncadd [#allocation5], 4294967040 }
  0x2c   :  { %110 = vsyncpa [#allocation5], 1 }

</bundles_post_ra>
